<compile_context>
chip_gen: v7x
topology: tpu7x:2x2x1
jax: 0.10.0
libtpu: 0.0.40
codegen_flags: <defaults>
</compile_context>

<pallas_src>
import functools

import jax
import jax.numpy as jnp
from jax import lax
from jax.experimental import pallas as pl
from jax.experimental.pallas import tpu as pltpu


# ----------------------------------------------------------------------------
# Small helpers
# ----------------------------------------------------------------------------
def _vmem_capacity_bytes():
    """Best-effort per-core VMEM capacity; conservative default (v7x)."""
    get_info = getattr(pltpu, "get_tpu_info", None)
    if get_info is not None:
        try:
            cap = getattr(get_info(), "vmem_capacity_bytes", None)
            if cap:
                return int(cap)
        except Exception:
            pass
    return 64 * 1024 * 1024


def _pick_acc_lanes(rows):
    """Chunk width for the pooled-sum loop.

    Keeps the carried f32 accumulator (rows x acc_lanes) around <= 16 vregs
    (64 KiB) so it stays in registers instead of spilling to VMEM.
    """
    lanes = ((16 * 1024) // max(rows, 1)) // 128 * 128
    return max(128, min(512, lanes))


def _lane_sum_f32(x_ref, *, acc_lanes, base, hw, mask_tail):
    """f32 sum over the last (lane) axis of the (B, C, T) block `x_ref`.

    acc_lanes: chunk width for the accumulation loop (multiple of 128).
    base:      global lane offset of this block's lane 0 (traced scalar or 0).
    hw:        number of valid lanes of the full array (static).
    mask_tail: statically True iff this block may run past `hw`; lanes with
               global index >= hw then contribute 0 (ragged last tile).
    """
    B, C, T = x_ref.shape
    n_full = T // acc_lanes
    rem = T - n_full * acc_lanes

    def masked(chunk_f32, off):
        if not mask_tail:
            return chunk_f32
        lane = lax.broadcasted_iota(jnp.int32, chunk_f32.shape, 2)
        return jnp.where(base + off + lane < hw, chunk_f32, 0.0)

    total = jnp.zeros((B, C, 1), jnp.float32)
    if n_full > 0:
        def body(j, acc):
            off = pl.multiple_of(j * acc_lanes, 128)
            chunk = x_ref[:, :, pl.ds(off, acc_lanes)].astype(jnp.float32)
            return acc + masked(chunk, off)

        acc0 = jnp.zeros((B, C, acc_lanes), jnp.float32)
        acc = lax.fori_loop(0, n_full, body, acc0, unroll=min(8, n_full))
        total = jnp.sum(acc, axis=-1, keepdims=True)
    if rem > 0:
        off = n_full * acc_lanes
        chunk = x_ref[:, :, off:off + rem].astype(jnp.float32)
        total = total + jnp.sum(masked(chunk, off), axis=-1, keepdims=True)
    return total


def _apply_gate(pooled, w1_ref, w2_ref, c_red):
    """Channel-attention gate: sigmoid(W2 @ relu(W1 @ pooled)).

    pooled: (B, C, 1) f32 per-channel means.
    w1_ref: (c_red, C, 1) f32, w1[r, c]            (first 1x1 conv).
    w2_ref: (c_red, C, 1) f32, w2^T, i.e. w2[c, r] (second 1x1 conv).

    c_red (= n_feat // reduction) is tiny, so the two 1x1 convs are unrolled
    as broadcast multiplies + reductions. Runs once per pallas_call, off the
    streaming hot loop; exp lands on the EUP slot.
    """
    logit = jnp.zeros(pooled.shape, jnp.float32)
    for r in range(c_red):
        h_r = jnp.sum(pooled * w1_ref[r], axis=1, keepdims=True)    # (B, 1, 1)
        h_r = jnp.maximum(h_r, 0.0)                                  # ReLU
        logit = logit + h_r * w2_ref[r]                              # (B, C, 1)
    return 1.0 / (1.0 + jnp.exp(-logit))                             # Sigmoid


# ----------------------------------------------------------------------------
# Kernels
# ----------------------------------------------------------------------------
def _ca_fused_kernel(x_ref, w1_ref, w2_ref, o_ref, *, hw, c_red, acc_lanes):
    """Whole-x-in-VMEM path: pool -> gate -> scale, single HBM read + write."""
    pooled = _lane_sum_f32(x_ref, acc_lanes=acc_lanes, base=0, hw=hw,
                           mask_tail=False) * (1.0 / hw)             # (N, C, 1)
    g = _apply_gate(pooled, w1_ref, w2_ref, c_red)                   # f32
    # Multiply in x's native dtype (bf16-native VPU on v6e/v7x); gate is f32.
    o_ref[...] = (x_ref[...] * g.astype(x_ref.dtype)).astype(o_ref.dtype)


def _pool_gate_kernel(x_ref, w1_ref, w2_ref, g_ref, *,
                      hw, c_red, acc_lanes, mask_tail):
    """Tiled pass 1: pooled-sum over HW tiles; gate folded into the finalize."""
    t = pl.program_id(1)
    nt = pl.num_programs(1)
    T = x_ref.shape[-1]

    @pl.when(t == 0)
    def _init():
        g_ref[...] = jnp.zeros_like(g_ref)

    g_ref[...] += _lane_sum_f32(x_ref, acc_lanes=acc_lanes, base=t * T,
                                hw=hw, mask_tail=mask_tail)

    @pl.when(t == nt - 1)
    def _finalize():
        pooled = g_ref[...] * (1.0 / hw)                             # (1, C, 1)
        g_ref[...] = _apply_gate(pooled, w1_ref, w2_ref, c_red)


def _scale_kernel(x_ref, g_ref, o_ref):
    """Tiled pass 2: o = x * g, broadcasting the per-channel gate over HW."""
    g = g_ref[...]                                                   # (1, C, 1)
    o_ref[...] = (x_ref[...] * g.astype(x_ref.dtype)).astype(o_ref.dtype)


# ----------------------------------------------------------------------------
# Wrapper: CALayer forward
# ----------------------------------------------------------------------------
def ca_layer(x, w1, w2, *, fused_bytes_limit=None, per_buffer_bytes=None):
    """Channel attention: x * sigmoid(conv1x1(relu(conv1x1(avgpool(x))))).

    x:  (N, C, H, W)
    w1: (C // reduction, C, 1, 1)  first 1x1 conv weight (bias=False)
    w2: (C, C // reduction, 1, 1)  second 1x1 conv weight (bias=False)
    """
    N, C, H, W = x.shape
    HW = H * W
    c_red = w1.shape[0]
    itemsize = jnp.dtype(x.dtype).itemsize
    x_bytes = N * C * HW * itemsize
    MiB = 1024 * 1024

    vmem_cap = _vmem_capacity_bytes()
    big_vmem = vmem_cap >= 96 * MiB                  # v5e / v6e (128 MiB VMEM)
    if fused_bytes_limit is None:
        fused_bytes_limit = (32 if big_vmem else 14) * MiB
    if per_buffer_bytes is None:
        per_buffer_bytes = (12 if big_vmem else 5) * MiB

    xr = x.reshape(N, C, HW)
    # Tiny weight prep (c_red*C elements, done once in XLA): lay the convs out
    # as (c_red, C, 1) so the in-kernel gate needs no reshapes / relayouts.
    w1a = w1.reshape(c_red, C, 1).astype(jnp.float32)
    w2a = w2.reshape(C, c_red).T.reshape(c_red, C, 1).astype(jnp.float32)

    # ------------- Fused single-kernel path (x resident in VMEM) ------------
    if x_bytes <= fused_bytes_limit:
        kernel = functools.partial(_ca_fused_kernel, hw=HW, c_red=c_red,
                                   acc_lanes=_pick_acc_lanes(N * C))
        out = pl.pallas_call(
            kernel,
            out_shape=jax.ShapeDtypeStruct((N, C, HW), x.dtype),
            compiler_params=pltpu.CompilerParams(
                vmem_limit_bytes=int(min(vmem_cap - 16 * MiB,
                                         max(32 * MiB, 3 * x_bytes + 8 * MiB)))),
            cost_estimate=pl.CostEstimate(
                flops=2 * N * C * HW, transcendentals=N * C,
                bytes_accessed=2 * x_bytes + 8 * c_red * C),
        )(xr, w1a, w2a)
        return out.reshape(N, C, H, W)

    # ------------- Tiled two-pass path (large x) ----------------------------
    row_bytes = C * itemsize                          # bytes per lane per batch row
    if HW * row_bytes <= per_buffer_bytes:
        t_hw = HW                                     # one full-extent tile
    else:
        t_hw = max(128, (per_buffer_bytes // row_bytes) // 128 * 128)
    n_t = -(-HW // t_hw)                              # cdiv
    mask_tail = (HW % t_hw) != 0
    acc_lanes = _pick_acc_lanes(C)
    tile_bytes = C * t_hw * itemsize
    # Size the VMEM limit to the actual double-buffered footprint (headroom
    # for Mosaic internal scratch), never above physical capacity.
    vmem_limit = int(min(vmem_cap - 16 * MiB, 4 * tile_bytes + 8 * MiB))
    vmem_limit = max(vmem_limit, 32 * MiB)

    # Pass 1: pooled mean + gate. Grid (N, HW tiles): the N axis is megacore-
    # parallel (each n owns its resident (1, C, 1) output accumulator), the HW
    # axis is the sequential reduction.
    # NOTE: for N == 1 on v7x the pooling pass stays on one TensorCore; a
    # per-core partial-sum split over HW halves is possible but not worth the
    # complexity here (pass 1 is ~1/3 of total HBM traffic).
    pool_kernel = functools.partial(_pool_gate_kernel, hw=HW, c_red=c_red,
                                    acc_lanes=acc_lanes, mask_tail=mask_tail)
    g = pl.pallas_call(
        pool_kernel,
        out_shape=jax.ShapeDtypeStruct((N, C, 1), jnp.float32),
        grid=(N, n_t),
        in_specs=[pl.BlockSpec((1, C, t_hw), lambda n, t: (n, 0, t)),
                  pl.BlockSpec((c_red, C, 1), lambda n, t: (0, 0, 0)),
                  pl.BlockSpec((c_red, C, 1), lambda n, t: (0, 0, 0))],
        out_specs=pl.BlockSpec((1, C, 1), lambda n, t: (n, 0, 0)),
        compiler_params=pltpu.CompilerParams(
            dimension_semantics=("parallel", "arbitrary"),
            vmem_limit_bytes=vmem_limit),
        cost_estimate=pl.CostEstimate(
            flops=N * C * HW, transcendentals=N * C,
            bytes_accessed=x_bytes + 4 * N * C + 8 * c_red * C),
    )(xr, w1a, w2a)

    # Pass 2: streaming channel-wise rescale; fully parallel, lane-dense tiles.
    out = pl.pallas_call(
        _scale_kernel,
        out_shape=jax.ShapeDtypeStruct((N, C, HW), x.dtype),
        grid=(N, n_t),
        in_specs=[pl.BlockSpec((1, C, t_hw), lambda n, t: (n, 0, t)),
                  pl.BlockSpec((1, C, 1), lambda n, t: (n, 0, 0))],
        out_specs=pl.BlockSpec((1, C, t_hw), lambda n, t: (n, 0, t)),
        compiler_params=pltpu.CompilerParams(
            dimension_semantics=("parallel", "parallel"),
            vmem_limit_bytes=vmem_limit),
        cost_estimate=pl.CostEstimate(
            flops=N * C * HW, transcendentals=0,
            bytes_accessed=2 * x_bytes + 4 * N * C),
    )(xr, g)
    return out.reshape(N, C, H, W)


# ----------------------------------------------------------------------------
# Pure-JAX reference mirroring the PyTorch forward
# ----------------------------------------------------------------------------
def ca_layer_ref(x, w1, w2):
    c_red, C = w1.shape[0], w1.shape[1]
    pooled = x.astype(jnp.float32).mean(axis=(2, 3))            # (N, C)
    h = jnp.maximum(pooled @ w1.reshape(c_red, C).T, 0.0)       # 1x1 conv + ReLU
    g = jax.nn.sigmoid(h @ w2.reshape(C, c_red).T)              # 1x1 conv + Sigmoid
    return (x.astype(jnp.float32) * g[:, :, None, None]).astype(x.dtype)


if __name__ == "__main__":
    # Module config: n_feat=32, reduction=16 -> C_red=2
    n_feat, reduction = 32, 16
    c_red = n_feat // reduction
    N = 2

    key = jax.random.PRNGKey(0)
    kx, k1, k2, kx2 = jax.random.split(key, 4)
    x = jax.random.normal(kx, (N, n_feat, 16, 16), dtype=jnp.float32)
    # Conv2d weight shapes: (out, in, 1, 1), bias=False.
    w1 = jax.random.normal(k1, (c_red, n_feat, 1, 1), dtype=jnp.float32) * 0.1
    w2 = jax.random.normal(k2, (n_feat, c_red, 1, 1), dtype=jnp.float32) * 0.1

    ref = ca_layer_ref(x, w1, w2)

    # 1) Default path: x is tiny -> fused single-kernel path.
    out_fused = jax.block_until_ready(jax.jit(ca_layer)(x, w1, w2))
    assert out_fused.shape == x.shape
    assert jnp.allclose(out_fused, ref, atol=1e-5, rtol=1e-5), "fused mismatch"

    # 2) Force the tiled two-pass path (multi-step reduction, gate-in-finalize).
    tiled = jax.jit(functools.partial(ca_layer, fused_bytes_limit=0,
                                      per_buffer_bytes=16 * 1024))
    out_tiled = jax.block_until_ready(tiled(x, w1, w2))
    assert jnp.allclose(out_tiled, ref, atol=1e-5, rtol=1e-5), "tiled mismatch"

    # 3) Force the tiled path with a ragged HW tail (HW=144, tile=128):
    #    exercises the in-kernel lane mask that replaced jnp.pad + slicing.
    x2 = jax.random.normal(kx2, (N, n_feat, 12, 12), dtype=jnp.float32)
    ref2 = ca_layer_ref(x2, w1, w2)
    out_ragged = jax.block_until_ready(tiled(x2, w1, w2))
    assert jnp.allclose(out_ragged, ref2, atol=1e-5, rtol=1e-5), "ragged mismatch"

    print("KERNEL_OK")
</pallas_src>

<mosaic_0001>
module attributes {stable_mosaic.version = 11 : i64} {
  func.func @_ca_fused_kernel(%arg0: memref<2x32x256xf32, #tpu.memory_space<vmem>>, %arg1: memref<2x32x1xf32, #tpu.memory_space<vmem>>, %arg2: memref<2x32x1xf32, #tpu.memory_space<vmem>>, %arg3: memref<2x32x256xf32, #tpu.memory_space<vmem>>) attributes {dimension_semantics = [], scalar_prefetch = 0 : i64, scratch_operands = 0 : i64, tpu.core_type = #tpu.core_type<tc>} {
    %cst = arith.constant 0.000000e+00 : f32
    %0 = vector.broadcast %cst : f32 to vector<2x32x256xf32>
    %c0_i32 = arith.constant 0 : i32
    %c256_i32 = arith.constant 256 : i32
    %1 = arith.muli %c0_i32, %c256_i32 : i32
    %2 = tpu.assume_multiple %1, 128 : i32
    %c0 = arith.constant 0 : index
    %c0_0 = arith.constant 0 : index
    %3 = arith.index_cast %2 : i32 to index
    %4 = vector.load %arg0[%c0, %c0_0, %3] : memref<2x32x256xf32, #tpu.memory_space<vmem>>, vector<2x32x256xf32>
    %5 = arith.addf %0, %4 : vector<2x32x256xf32>
    %c1_i32 = arith.constant 1 : i32
    %cst_1 = arith.constant dense<0.000000e+00> : vector<2x32xf32>
    %6 = vector.multi_reduction <add>, %5, %cst_1 [2] : vector<2x32x256xf32> to vector<2x32xf32>
    %7 = vector.shape_cast %6 : vector<2x32xf32> to vector<2x32x1xf32>
    %cst_2 = arith.constant 3.906250e-03 : f32
    %8 = vector.broadcast %cst_2 : f32 to vector<2x32x1xf32>
    %9 = arith.mulf %7, %8 : vector<2x32x1xf32>
    %cst_3 = arith.constant 0.000000e+00 : f32
    %10 = vector.broadcast %cst_3 : f32 to vector<2x32x1xf32>
    %c0_4 = arith.constant 0 : index
    %c0_5 = arith.constant 0 : index
    %c0_6 = arith.constant 0 : index
    %11 = vector.load %arg1[%c0_4, %c0_5, %c0_6] : memref<2x32x1xf32, #tpu.memory_space<vmem>>, vector<1x32x1xf32>
    %12 = vector.shape_cast %11 : vector<1x32x1xf32> to vector<32x1xf32>
    %13 = vector.shape_cast %12 : vector<32x1xf32> to vector<1x32x1xf32>
    %14 = vector.broadcast %13 : vector<1x32x1xf32> to vector<2x32x1xf32>
    %15 = arith.mulf %9, %14 : vector<2x32x1xf32>
    %cst_7 = arith.constant dense<0.000000e+00> : vector<2x1xf32>
    %16 = vector.multi_reduction <add>, %15, %cst_7 [1] : vector<2x32x1xf32> to vector<2x1xf32>
    %17 = vector.shape_cast %16 : vector<2x1xf32> to vector<2x1x1xf32>
    %cst_8 = arith.constant 0.000000e+00 : f32
    %18 = vector.broadcast %cst_8 : f32 to vector<2x1x1xf32>
    %19 = arith.maximumf %17, %18 : vector<2x1x1xf32>
    %c0_9 = arith.constant 0 : index
    %c0_10 = arith.constant 0 : index
    %c0_11 = arith.constant 0 : index
    %20 = vector.load %arg2[%c0_9, %c0_10, %c0_11] : memref<2x32x1xf32, #tpu.memory_space<vmem>>, vector<1x32x1xf32>
    %21 = vector.shape_cast %20 : vector<1x32x1xf32> to vector<32x1xf32>
    %22 = vector.shape_cast %21 : vector<32x1xf32> to vector<1x32x1xf32>
    %23 = vector.broadcast %19 : vector<2x1x1xf32> to vector<2x32x1xf32>
    %24 = vector.broadcast %22 : vector<1x32x1xf32> to vector<2x32x1xf32>
    %25 = arith.mulf %23, %24 : vector<2x32x1xf32>
    %26 = arith.addf %10, %25 : vector<2x32x1xf32>
    %c1 = arith.constant 1 : index
    %c0_12 = arith.constant 0 : index
    %c0_13 = arith.constant 0 : index
    %27 = vector.load %arg1[%c1, %c0_12, %c0_13] : memref<2x32x1xf32, #tpu.memory_space<vmem>>, vector<1x32x1xf32>
    %28 = vector.shape_cast %27 : vector<1x32x1xf32> to vector<32x1xf32>
    %29 = vector.shape_cast %28 : vector<32x1xf32> to vector<1x32x1xf32>
    %30 = vector.broadcast %29 : vector<1x32x1xf32> to vector<2x32x1xf32>
    %31 = arith.mulf %9, %30 : vector<2x32x1xf32>
    %cst_14 = arith.constant dense<0.000000e+00> : vector<2x1xf32>
    %32 = vector.multi_reduction <add>, %31, %cst_14 [1] : vector<2x32x1xf32> to vector<2x1xf32>
    %33 = vector.shape_cast %32 : vector<2x1xf32> to vector<2x1x1xf32>
    %cst_15 = arith.constant 0.000000e+00 : f32
    %34 = vector.broadcast %cst_15 : f32 to vector<2x1x1xf32>
    %35 = arith.maximumf %33, %34 : vector<2x1x1xf32>
    %c1_16 = arith.constant 1 : index
    %c0_17 = arith.constant 0 : index
    %c0_18 = arith.constant 0 : index
    %36 = vector.load %arg2[%c1_16, %c0_17, %c0_18] : memref<2x32x1xf32, #tpu.memory_space<vmem>>, vector<1x32x1xf32>
    %37 = vector.shape_cast %36 : vector<1x32x1xf32> to vector<32x1xf32>
    %38 = vector.shape_cast %37 : vector<32x1xf32> to vector<1x32x1xf32>
    %39 = vector.broadcast %35 : vector<2x1x1xf32> to vector<2x32x1xf32>
    %40 = vector.broadcast %38 : vector<1x32x1xf32> to vector<2x32x1xf32>
    %41 = arith.mulf %39, %40 : vector<2x32x1xf32>
    %42 = arith.addf %26, %41 : vector<2x32x1xf32>
    %cst_19 = arith.constant 0.000000e+00 : f32
    %43 = vector.broadcast %cst_19 : f32 to vector<2x32x1xf32>
    %44 = arith.subf %43, %42 : vector<2x32x1xf32>
    %45 = math.exp %44 : vector<2x32x1xf32>
    %cst_20 = arith.constant 1.000000e+00 : f32
    %46 = vector.broadcast %cst_20 : f32 to vector<2x32x1xf32>
    %47 = arith.addf %46, %45 : vector<2x32x1xf32>
    %cst_21 = arith.constant 1.000000e+00 : f32
    %48 = vector.broadcast %cst_21 : f32 to vector<2x32x1xf32>
    %49 = arith.divf %48, %47 : vector<2x32x1xf32>
    %c0_22 = arith.constant 0 : index
    %c0_23 = arith.constant 0 : index
    %c0_24 = arith.constant 0 : index
    %50 = vector.load %arg0[%c0_22, %c0_23, %c0_24] : memref<2x32x256xf32, #tpu.memory_space<vmem>>, vector<2x32x256xf32>
    %51 = vector.broadcast %49 : vector<2x32x1xf32> to vector<2x32x256xf32>
    %52 = arith.mulf %50, %51 : vector<2x32x256xf32>
    %c0_25 = arith.constant 0 : index
    %c0_26 = arith.constant 0 : index
    %c0_27 = arith.constant 0 : index
    %53 = vector.load %arg3[%c0_25, %c0_26, %c0_27] : memref<2x32x256xf32, #tpu.memory_space<vmem>>, vector<2x32x256xf32>
    tpu.vector_store %arg3[%c0_25, %c0_26, %c0_27], %52 {strides = array<i32>} : memref<2x32x256xf32, #tpu.memory_space<vmem>>, vector<2x32x256xf32>,
    return
  }
}

</mosaic_0001>

<bundles_post_ra>
// kernel: ca_layer.1
= control target key start
LH: loop header
LB: loop body
LE: loop exit
PB: predicated region body
PF: predicated region fallthrough
CT: control target
= control target key end

     0   :  { %v384_v24 = vmov 0   ;;  %vm90_vm0 = vcmask 7168   ;;  %s629_s0 = inlined_call_operand.vmem [shape: f32[2,32,256], index: 0, kind: input, shape index: {}]   ;;  %s630_s1 = inlined_call_operand.vmem [shape: f32[2,32,1], index: 1, kind: input, shape index: {}]   ;;  %s631_s2 = inlined_call_operand.vmem [shape: f32[2,32,1], index: 2, kind: input, shape index: {}]   ;;  %s632_s3 = inlined_call_operand.vmem [shape: f32[2,32,256], index: 3, kind: output, shape index: {}]  }
   0x1   :  { %v408_v0 = vld [vmem:[%s629_s0 + $0x40] sm:$0xff]  ;;  %v413_v1 = vld [vmem:[%s629_s0 + $0x48] sm:$0xff]  ;;  %v430_v5 = vld [vmem:[%s629_s0 + $0x50] sm:$0xff]  ;;  %351 = vset.pattern.permute.xlu1 %v384_v24  ;;  %350 = vset.pattern.permute.xlu0 %v384_v24 }
   0x2   :  { %v418_v2 = vld [vmem:[%s629_s0] sm:$0xff]  ;;  %v58_v3 = vadd.f32 %v413_v1, %v408_v0  ;;  %v425_v4 = vld [vmem:[%s629_s0 + $0x8] sm:$0xff]  ;;  %v435_v6 = vld [vmem:[%s629_s0 + $0x58] sm:$0xff] }
   0x3   :  { %v46_v7 = vadd.f32 %v425_v4, %v418_v2  ;;  %v442_v8 = vld [vmem:[%s629_s0 + $0x10] sm:$0xff]  ;;  %v447_v9 = vld [vmem:[%s629_s0 + $0x18] sm:$0xff]  ;;  %v61_v10 = vadd.f32 %v435_v6, %v430_v5  ;;  %v456_v12 = vld [vmem:[%s629_s0 + $0x60] sm:$0xff] }
   0x4   :  { %59 = vadd.xlane.f32.xlu1 %v58_v3  ;;  %v49_v11 = vadd.f32 %v447_v9, %v442_v8  ;;  %v461_v13 = vld [vmem:[%s629_s0 + $0x68] sm:$0xff]  ;;  %v466_v14 = vld [vmem:[%s629_s0 + $0x20] sm:$0xff]  ;;  %v480_v18 = vld [vmem:[%s629_s0 + $0x70] sm:$0xff] }
   0x5   :  { %47 = vadd.xlane.f32.xlu0 %v46_v7  ;;  %v471_v15 = vld [vmem:[%s629_s0 + $0x28] sm:$0xff]  ;;  %v64_v16 = vadd.f32 %v461_v13, %v456_v12  ;;  %v485_v19 = vld [vmem:[%s629_s0 + $0x78] sm:$0xff]  ;;  %v490_v20 = vld [vmem:[%s629_s0 + $0x30] sm:$0xff] }
   0x6   :  { %v52_v17 = vadd.f32 %v471_v15, %v466_v14  ;;  %v495_v21 = vld [vmem:[%s629_s0 + $0x38] sm:$0xff]  ;;  %v67_v22 = vadd.f32 %v485_v19, %v480_v18  ;;  %v78_v28 = vld [vmem:[%s630_s1] sm:$0xff]  ;;  %v79_v33 = vld [vmem:[%s630_s1 + $0x8] sm:$0xff] }
   0x7   :  { %v55_v23 = vadd.f32 %v495_v21, %v490_v20  ;;  %v341_v29 = vld [vmem:[%s630_s1 + $0x20] sm:$0xff]  ;;  %v342_v36 = vld [vmem:[%s630_s1 + $0x28] sm:$0xff]  ;;  %v80_v52 = vld [vmem:[%s630_s1 + $0x10] sm:$0xff] }
   0x8   :  { %62 = vadd.xlane.f32.xlu1 %v61_v10  ;;  %v343_v53 = vld [vmem:[%s630_s1 + $0x30] sm:$0xff]  ;;  %v81_v60 = vld [vmem:[%s630_s1 + $0x18] sm:$0xff] }
   0x9   :  { %50 = vadd.xlane.f32.xlu0 %v49_v11  ;;  %v344_v61 = vld [vmem:[%s630_s1 + $0x38] sm:$0xff] }
   0xc   :  { %65 = vadd.xlane.f32.xlu1 %v64_v16 }
   0xd   :  { %53 = vadd.xlane.f32.xlu0 %v52_v17 }
  0x10   :  { %68 = vadd.xlane.f32.xlu1 %v67_v22 }
  0x11   :  { %56 = vadd.xlane.f32.xlu0 %v55_v23 }
  0x91   :  { %v60_v25 = vpop.xlane.xlu1 %59 }
  0x92   :  { %v74_v26 = vmul.f32 0.00390625, %v60_v25  ;;  %v48_v27 = vpop.xlane.xlu0 %47 }
  0x93   :  { %v70_v42 = vmul.f32 0.00390625, %v48_v27 }
  0x94   :  { %v86_v30 = vmul.f32 %v78_v28, %v74_v26  ;;  %v148_v31 = vmul.f32 %v341_v29, %v74_v26 }
  0x95   :  { %v63_v32 = vpop.xlane.xlu1 %62  ;;  %v82_v56 = vmul.f32 %v78_v28, %v70_v42  ;;  %v144_v57 = vmul.f32 %v341_v29, %v70_v42 }
  0x96   :  { %v75_v34 = vmul.f32 0.00390625, %v63_v32  ;;  %v51_v35 = vpop.xlane.xlu0 %50  ;;  %v104_v38 = vsel %vm90_vm0, %v86_v30, 0.0  ;;  %v165_v39 = vsel %vm90_vm0, %v148_v31, 0.0 }
  0x97   :  { %v71_v37 = vmul.f32 0.00390625, %v51_v35  ;;  %v91_v27 = vsel %vm90_vm0, %v82_v56, 0.0  ;;  %v152_v28 = vsel %vm90_vm0, %v144_v57, 0.0 }
  0x98   :  { %v87_v40 = vmul.f32 %v79_v33, %v75_v34  ;;  %v149_v41 = vmul.f32 %v342_v36, %v75_v34 }
  0x99   :  { %v83_v43 = vmul.f32 %v79_v33, %v71_v37  ;;  %v66_v44 = vpop.xlane.xlu1 %65  ;;  %v145_v47 = vmul.f32 %v342_v36, %v71_v37 }
  0x9a   :  { %v105_v45 = vsel %vm90_vm0, %v87_v40, 0.0  ;;  %v166_v46 = vsel %vm90_vm0, %v149_v41, 0.0  ;;  %v76_v48 = vmul.f32 0.00390625, %v66_v44  ;;  %v54_v49 = vpop.xlane.xlu0 %53 }
  0x9b   :  { %v106_v50 = vadd.f32 %v105_v45, %v104_v38  ;;  %v167_v51 = vadd.f32 %v166_v46, %v165_v39  ;;  %v92_v58 = vsel %vm90_vm0, %v83_v43, 0.0  ;;  %v72_v59 = vmul.f32 0.00390625, %v54_v49 }
  0x9c   :  { %v88_v54 = vmul.f32 %v80_v52, %v76_v48  ;;  %v150_v55 = vmul.f32 %v343_v53, %v76_v48  ;;  %v153_v63 = vsel %vm90_vm0, %v145_v47, 0.0  ;;  %v93_v31 = vadd.f32 %v92_v58, %v91_v27 }
  0x9d   :  { %v69_v62 = vpop.xlane.xlu1 %68  ;;  %v84_v22 = vmul.f32 %v80_v52, %v72_v59  ;;  %v146_v23 = vmul.f32 %v343_v53, %v72_v59  ;;  %v154_v32 = vadd.f32 %v153_v63, %v152_v28  ;;  %v346_v28 = vld [vmem:[%s631_s2 + $0x28] sm:$0xff] }
  0x9e   :  { %v107_v3 = vsel %vm90_vm0, %v88_v54, 0.0  ;;  %v168_v7 = vsel %vm90_vm0, %v150_v55, 0.0  ;;  %v77_v10 = vmul.f32 0.00390625, %v69_v62  ;;  %v57_v11 = vpop.xlane.xlu0 %56 }
  0x9f   :  { %v108_v16 = vadd.f32 %v107_v3, %v106_v50  ;;  %v169_v17 = vadd.f32 %v168_v7, %v167_v51  ;;  %v73_v26 = vmul.f32 0.00390625, %v57_v11  ;;  %v94_v29 = vsel %vm90_vm0, %v84_v22, 0.0  ;;  %v120_v22 = vld [vmem:[%s631_s2 + $0x8] sm:$0xff] }
  0xa0   :  { %v89_v24 = vmul.f32 %v81_v60, %v77_v10  ;;  %v151_v25 = vmul.f32 %v344_v61, %v77_v10  ;;  %v155_v30 = vsel %vm90_vm0, %v146_v23, 0.0  ;;  %v95_v39 = vadd.f32 %v94_v29, %v93_v31  ;;  %v121_v23 = vld [vmem:[%s631_s2 + $0x10] sm:$0xff] }
  0xa1   :  { %v85_v37 = vmul.f32 %v81_v60, %v73_v26  ;;  %v147_v38 = vmul.f32 %v344_v61, %v73_v26  ;;  %v156_v40 = vadd.f32 %v155_v30, %v154_v32  ;;  %v347_v29 = vld [vmem:[%s631_s2 + $0x30] sm:$0xff]  ;;  %v348_v30 = vld [vmem:[%s631_s2 + $0x38] sm:$0xff] }
  0xa2   :  { %v109_v33 = vsel %vm90_vm0, %v89_v24, 0.0  ;;  %v170_v34 = vsel %vm90_vm0, %v151_v25, 0.0  ;;  %v122_v24 = vld [vmem:[%s631_s2 + $0x18] sm:$0xff]  ;;  %v345_v25 = vld [vmem:[%s631_s2 + $0x20] sm:$0xff] }
  0xa3   :  { %v110_v35 = vadd.f32 %v109_v33, %v108_v16  ;;  %v171_v36 = vadd.f32 %v170_v34, %v169_v17  ;;  %v96_v43 = vsel %vm90_vm0, %v85_v37, 0.0  ;;  %v157_v44 = vsel %vm90_vm0, %v147_v38, 0.0  ;;  %v119_v17 = vld [vmem:[%s631_s2] sm:$0xff] }
  0xa4   :  { %v97_v45 = vadd.f32 %v96_v43, %v95_v39  ;;  %v158_v46 = vadd.f32 %v157_v44, %v156_v40 }
  0xa5   :  { %v111_v41 = vrot.slane %v110_v35, 4  ;;  %v172_v42 = vrot.slane %v171_v36, 4 }
  0xa6   :  { %v98_v49 = vrot.slane %v97_v45, 4  ;;  %v159_v50 = vrot.slane %v158_v46, 4 }
  0xa7   :  { %v112_v47 = vadd.f32 %v111_v41, %v110_v35  ;;  %v173_v48 = vadd.f32 %v172_v42, %v171_v36 }
  0xa8   :  { %v99_v53 = vadd.f32 %v98_v49, %v97_v45  ;;  %v160_v54 = vadd.f32 %v159_v50, %v158_v46 }
  0xa9   :  { %v113_v51 = vrot.slane %v112_v47, 2  ;;  %v174_v52 = vrot.slane %v173_v48, 2 }
  0xaa   :  { %v100_v57 = vrot.slane %v99_v53, 2  ;;  %v161_v58 = vrot.slane %v160_v54, 2 }
  0xab   :  { %v114_v55 = vadd.f32 %v113_v51, %v112_v47  ;;  %v175_v56 = vadd.f32 %v174_v52, %v173_v48 }
  0xac   :  { %v101_v61 = vadd.f32 %v100_v57, %v99_v53  ;;  %v162_v62 = vadd.f32 %v161_v58, %v160_v54 }
  0xad   :  { %v115_v59 = vrot.slane %v114_v55, 1  ;;  %v176_v60 = vrot.slane %v175_v56, 1 }
  0xae   :  { %v102_v63 = vrot.slane %v101_v61, 1  ;;  %v163_v3 = vrot.slane %v162_v62, 1 }
  0xaf   :  { %v116_v7 = vadd.f32 %v115_v59, %v114_v55  ;;  %v177_v10 = vadd.f32 %v176_v60, %v175_v56 }
  0xb0   :  { %v103_v11 = vadd.f32 %v102_v63, %v101_v61  ;;  %v164_v16 = vadd.f32 %v163_v3, %v162_v62 }
  0xb1   :  { %v118_v31 = vmax.f32 %v116_v7, 0.0  ;;  %v179_v32 = vmax.f32 %v177_v10, 0.0 }
  0xb2   :  { %v117_v26 = vmax.f32 %v103_v11, 0.0  ;;  %v178_v27 = vmax.f32 %v164_v16, 0.0 }
  0xb3   :  { %v127_v41 = vmul.f32 %v119_v17, %v118_v31  ;;  %v189_v42 = vmul.f32 %v345_v25, %v179_v32  ;;  %v128_v46 = vmul.f32 %v120_v22, %v118_v31  ;;  %v190_v48 = vmul.f32 %v346_v28, %v179_v32 }
  0xb4   :  { %v123_v33 = vmul.f32 %v119_v17, %v117_v26  ;;  %v124_v34 = vmul.f32 %v120_v22, %v117_v26  ;;  %v125_v35 = vmul.f32 %v121_v23, %v117_v26  ;;  %v126_v36 = vmul.f32 %v122_v24, %v117_v26 }
  0xb5   :  { %v185_v37 = vmul.f32 %v345_v25, %v178_v27  ;;  %v186_v38 = vmul.f32 %v346_v28, %v178_v27  ;;  %v187_v39 = vmul.f32 %v347_v29, %v178_v27  ;;  %v188_v40 = vmul.f32 %v348_v30, %v178_v27 }
  0xb6   :  { %v197_v52 = vadd.f32 %v189_v42, %v127_v41  ;;  %v129_v57 = vmul.f32 %v121_v23, %v118_v31  ;;  %v198_v58 = vadd.f32 %v190_v48, %v128_v46  ;;  %v191_v59 = vmul.f32 %v347_v29, %v179_v32 }
  0xb7   :  { %v193_v43 = vadd.f32 %v185_v37, %v123_v33  ;;  %v194_v44 = vadd.f32 %v186_v38, %v124_v34  ;;  %v195_v45 = vadd.f32 %v187_v39, %v125_v35  ;;  %v196_v47 = vadd.f32 %v188_v40, %v126_v36 }
  0xb8   :  { %v205_v60 = vsub.f32 0.0, %v197_v52  ;;  %v130_v62 = vmul.f32 %v122_v24, %v118_v31  ;;  %v206_v63 = vsub.f32 0.0, %v198_v58  ;;  %v192_v3 = vmul.f32 %v348_v30, %v179_v32 }
  0xb9   :  { %v201_v49 = vsub.f32 0.0, %v193_v43  ;;  %v202_v50 = vsub.f32 0.0, %v194_v44  ;;  %v203_v51 = vsub.f32 0.0, %v195_v45  ;;  %v204_v53 = vsub.f32 0.0, %v196_v47 }
  0xba   :  { %v199_v7 = vadd.f32 %v191_v59, %v129_v57  ;;  %v217_v10 = vmul.f32 1.442695, %v205_v60  ;;  %v219_v11 = vmul.f32 1.442695, %v206_v63  ;;  %v200_v16 = vadd.f32 %v192_v3, %v130_v62 }
  0xbb   :  { %v209_v54 = vmul.f32 1.442695, %v201_v49  ;;  %v211_v55 = vmul.f32 1.442695, %v202_v50  ;;  %v213_v56 = vmul.f32 1.442695, %v203_v51 }
  0xbc   :  { %v215_v61 = vmul.f32 1.442695, %v204_v53  ;;  %v207_v17 = vsub.f32 0.0, %v199_v7  ;;  %v208_v28 = vsub.f32 0.0, %v200_v16 }
  0xbd   :  { %352 = vpow2.f32 %v209_v54 }
  0xbe   :  { %354 = vpow2.f32 %v211_v55  ;;  %v221_v29 = vmul.f32 1.442695, %v207_v17  ;;  %v223_v30 = vmul.f32 1.442695, %v208_v28 }
  0xbf   :  { %356 = vpow2.f32 %v213_v56 }
  0xc0   :  { %358 = vpow2.f32 %v215_v61 }
  0xc1   :  { %360 = vpow2.f32 %v217_v10 }
  0xc2   :  { %362 = vpow2.f32 %v219_v11 }
  0xc7   :  { %v353_v22 = vpop.eup %352 }
  0xc8   :  { %v355_v25 = vpop.eup %354  ;;  %v225_v23 = vadd.f32 1.0, %v353_v22 }
  0xc9   :  { %v357_v26 = vpop.eup %356  ;;  %v226_v27 = vadd.f32 1.0, %v355_v25 }
  0xca   :  { %364 = vrcp.f32 %v225_v23  ;;  %v227_v24 = vadd.f32 1.0, %v357_v26  ;;  %v359_v31 = vpop.eup %358 }
  0xcb   :  { %366 = vrcp.f32 %v226_v27  ;;  %v228_v32 = vadd.f32 1.0, %v359_v31  ;;  %v361_v33 = vpop.eup %360 }
  0xcc   :  { %368 = vpow2.f32 %v221_v29  ;;  %v363_v34 = vpop.eup %362  ;;  %v229_v35 = vadd.f32 1.0, %v361_v33 }
  0xcd   :  { %370 = vrcp.f32 %v227_v24  ;;  %v230_v38 = vadd.f32 1.0, %v363_v34 }
  0xce   :  { %372 = vpow2.f32 %v223_v30 }
  0xcf   :  { %374 = vrcp.f32 %v228_v32 }
  0xd0   :  { %376 = vrcp.f32 %v229_v35 }
  0xd1   :  { %378 = vrcp.f32 %v230_v38 }
  0xd4   :  { %v365_v36 = vpop.eup %364 }
  0xd5   :  { %v367_v37 = vpop.eup %366  ;;  %267 = vperm.xlu0 %350, %v365_v36  }
  0xd6   :  { %272 = vperm.xlu1 %351, %v367_v37   ;;  %v369_v39 = vpop.eup %368 }
  0xd7   :  { %v371_v40 = vpop.eup %370  ;;  %v231_v41 = vadd.f32 1.0, %v369_v39 }
  0xd8   :  { %v373_v42 = vpop.eup %372 }
  0xd9   :  { %v375_v43 = vpop.eup %374  ;;  %380 = vrcp.f32 %v231_v41  ;;  %v232_v44 = vadd.f32 1.0, %v373_v42 }
  0xda   :  { %277 = vperm.xlu1 %351, %v371_v40   ;;  %v377_v45 = vpop.eup %376 }
  0xdb   :  { %382 = vrcp.f32 %v232_v44  ;;  %v379_v46 = vpop.eup %378 }
  0xde   :  { %282 = vperm.xlu1 %351, %v375_v43  }
  0xe2   :  { %287 = vperm.xlu1 %351, %v377_v45  }
  0xe3   :  { %v381_v47 = vpop.eup %380 }
  0xe5   :  { %v383_v48 = vpop.eup %382 }
  0xe6   :  { %292 = vperm.xlu1 %351, %v379_v46  }
  0xea   :  { %297 = vperm.xlu1 %351, %v381_v47  }
  0xee   :  { %302 = vperm.xlu1 %351, %v383_v48  }
 0x154   :  { %v268_v49 = vpop.permute.xlu0 %267 }
 0x155   :  { %v273_v50 = vpop.permute.xlu1 %272  ;;  %v305_v51 = vmul.f32 %v268_v49, %v418_v2  ;;  %v306_v52 = vmul.f32 %v268_v49, %v425_v4 }
 0x156   :  { %v307_v53 = vmul.f32 %v273_v50, %v442_v8  ;;  %v308_v54 = vmul.f32 %v273_v50, %v447_v9 }
 0x157   :  { %321 = vst [vmem:[%s632_s3] sm:$0xff] %v305_v51  ;;  %322 = vst [vmem:[%s632_s3 + $0x8] sm:$0xff] %v306_v52 }
 0x158   :  { %323 = vst [vmem:[%s632_s3 + $0x10] sm:$0xff] %v307_v53  ;;  %324 = vst [vmem:[%s632_s3 + $0x18] sm:$0xff] %v308_v54 }
 0x159   :  { %v278_v2 = vpop.permute.xlu1 %277 }
 0x15a   :  { %v309_v4 = vmul.f32 %v278_v2, %v466_v14  ;;  %v310_v8 = vmul.f32 %v278_v2, %v471_v15 }
 0x15c   :  { %325 = vst [vmem:[%s632_s3 + $0x20] sm:$0xff] %v309_v4  ;;  %326 = vst [vmem:[%s632_s3 + $0x28] sm:$0xff] %v310_v8 }
 0x15d   :  { %v283_v9 = vpop.permute.xlu1 %282 }
 0x15e   :  { %v311_v55 = vmul.f32 %v283_v9, %v490_v20  ;;  %v312_v56 = vmul.f32 %v283_v9, %v495_v21 }
 0x160   :  { %327 = vst [vmem:[%s632_s3 + $0x30] sm:$0xff] %v311_v55  ;;  %328 = vst [vmem:[%s632_s3 + $0x38] sm:$0xff] %v312_v56 }
 0x161   :  { %v288_v14 = vpop.permute.xlu1 %287 }
 0x162   :  { %v313_v15 = vmul.f32 %v288_v14, %v408_v0  ;;  %v314_v57 = vmul.f32 %v288_v14, %v413_v1 }
 0x164   :  { %329 = vst [vmem:[%s632_s3 + $0x40] sm:$0xff] %v313_v15  ;;  %330 = vst [vmem:[%s632_s3 + $0x48] sm:$0xff] %v314_v57 }
 0x165   :  { %v293_v20 = vpop.permute.xlu1 %292 }
 0x166   :  { %v315_v21 = vmul.f32 %v293_v20, %v430_v5  ;;  %v316_v58 = vmul.f32 %v293_v20, %v435_v6 }
 0x168   :  { %331 = vst [vmem:[%s632_s3 + $0x50] sm:$0xff] %v315_v21  ;;  %332 = vst [vmem:[%s632_s3 + $0x58] sm:$0xff] %v316_v58 }
 0x169   :  { %v298_v0 = vpop.permute.xlu1 %297 }
 0x16a   :  { %v317_v1 = vmul.f32 %v298_v0, %v456_v12  ;;  %v318_v59 = vmul.f32 %v298_v0, %v461_v13 }
 0x16c   :  { %333 = vst [vmem:[%s632_s3 + $0x60] sm:$0xff] %v317_v1  ;;  %334 = vst [vmem:[%s632_s3 + $0x68] sm:$0xff] %v318_v59 }
 0x16d   :  { %v303_v5 = vpop.permute.xlu1 %302 }
 0x16e   :  { %v319_v6 = vmul.f32 %v303_v5, %v480_v18  ;;  %v320_v60 = vmul.f32 %v303_v5, %v485_v19 }
 0x170   :  { %335 = vst [vmem:[%s632_s3 + $0x70] sm:$0xff] %v319_v6  ;;  %336 = vst [vmem:[%s632_s3 + $0x78] sm:$0xff] %v320_v60 }

</bundles_post_ra>
